<compile_context>
chip_gen: v7x
topology: tpu7x:2x2x1
jax: 0.10.0
libtpu: 0.0.40
codegen_flags: <defaults>
</compile_context>

<pallas_src>
import math
import functools

import jax
import jax.numpy as jnp
import numpy as np
from jax import lax
from jax.experimental import pallas as pl
from jax.experimental.pallas import tpu as pltpu

# TODO(synk): re-derive this ceiling (~56 MiB) for v7x, whose physical VMEM is
# 64 MiB (vs 128 MiB on v5e/v6e).
_VMEM_LIMIT = 64 * 1024 * 1024


def _pick_tile(n, target):
    """Largest tile <= target that divides n (prefer multiples of 8)."""
    if n <= target:
        return n
    fallback = 1
    for t in range(target, 0, -1):
        if n % t == 0:
            if t % 8 == 0:
                return t
            if fallback == 1:
                fallback = t
    return fallback


# =========================== kernel (1): QKV + RoPE ===========================

def _qkv_rope_kernel(x_ref, nw_ref, w_ref, cos_ref, sin_ref, o_ref, *,
                     eps, nq, nk, nh, nkv):
    """RMSNorm -> single [Wq|Wk|Wv] matmul -> RoPE on the activation.

    Q/K weight columns were pre-permuted (prepare_params) to
    [all heads' real comps | all heads' imag comps], so the RoPE partner
    element is always at offset width/2: the shuffle is one half-rotate
    (equivalent to pltpu.roll(a, width//2, axis=-1); direction irrelevant),
    V columns skip RoPE entirely.
    """
    x = x_ref[0].astype(jnp.float32)                        # (ts, D)
    ms = jnp.mean(x * x, axis=-1, keepdims=True)
    xn = (x * lax.rsqrt(ms + eps) * nw_ref[...]).astype(jnp.bfloat16)
    qkv = jnp.dot(xn, w_ref[...], preferred_element_type=jnp.float32)  # (ts, nq+2nk)

    q = qkv[:, :nq]
    k = qkv[:, nq:nq + nk]
    v = qkv[:, nq + nk:]

    c = cos_ref[...]                                        # (ts, hd/2)
    s = sin_ref[...]
    ns = -s
    cos_q = jnp.concatenate([c] * (2 * nh), axis=-1)        # (ts, nq)
    sin_q = jnp.concatenate([ns] * nh + [s] * nh, axis=-1)
    cos_k = jnp.concatenate([c] * (2 * nkv), axis=-1)       # (ts, nk)
    sin_k = jnp.concatenate([ns] * nkv + [s] * nkv, axis=-1)

    def half_rotate(a):
        # swap the [real | imag] halves; == pltpu.roll(a, a.shape[-1]//2, -1)
        half = a.shape[-1] // 2
        return jnp.concatenate([a[:, half:], a[:, :half]], axis=-1)

    q_rot = q * cos_q + half_rotate(q) * sin_q
    k_rot = k * cos_k + half_rotate(k) * sin_k
    o_ref[0] = jnp.concatenate([q_rot, k_rot, v], axis=-1).astype(o_ref.dtype)


def fused_qkv_rope(x, norm_w, wqkv, cos, sin, eps, *, nh, nkv, hd, seq_tile=256):
    B, S, D = x.shape
    Ntot = wqkv.shape[1]
    hd2 = hd // 2
    ts = _pick_tile(S, seq_tile)
    grid = (B, S // ts)
    # TODO(synk): at real Llama sizes (D=4096) the resident wqkv must itself be
    # tiled over N/K with a reduction axis like the FFN kernel below.
    kern = functools.partial(_qkv_rope_kernel, eps=eps, nq=nh * hd, nk=nkv * hd,
                             nh=nh, nkv=nkv)
    return pl.pallas_call(
        kern,
        out_shape=jax.ShapeDtypeStruct((B, S, Ntot), jnp.bfloat16),
        grid=grid,
        in_specs=[pl.BlockSpec((1, ts, D), lambda b, si: (b, si, 0)),
                  pl.BlockSpec((1, D), lambda b, si: (0, 0)),
                  pl.BlockSpec((D, Ntot), lambda b, si: (0, 0)),
                  pl.BlockSpec((ts, hd2), lambda b, si: (si, 0)),
                  pl.BlockSpec((ts, hd2), lambda b, si: (si, 0))],
        out_specs=pl.BlockSpec((1, ts, Ntot), lambda b, si: (b, si, 0)),
        compiler_params=pltpu.CompilerParams(
            dimension_semantics=("parallel", "parallel"),
            vmem_limit_bytes=_VMEM_LIMIT),
    )(x, norm_w.reshape(1, D), wqkv, cos, sin)


# ====================== kernel (2): flash-style attention =====================

def _flash_attn_kernel(q_ref, k_ref, v_ref, o_ref, m_sc, l_sc, acc_sc, *, scale):
    t = pl.program_id(2)

    @pl.when(t == 0)
    def _():
        m_sc[...] = jnp.full_like(m_sc, -jnp.inf)
        l_sc[...] = jnp.zeros_like(l_sc)
        acc_sc[...] = jnp.zeros_like(acc_sc)

    q = q_ref[0, 0]                                         # (S, hd)  bf16
    k = k_ref[0, 0]                                         # (tk, hd) bf16
    v = v_ref[0, 0]                                         # (tk, hd) bf16
    s = lax.dot_general(q, k, (((1,), (1,)), ((), ())),
                        preferred_element_type=jnp.float32) * scale    # (S, tk)
    m_prev = m_sc[...]
    m_new = jnp.maximum(m_prev, jnp.max(s, axis=-1, keepdims=True))
    alpha = jnp.exp(m_prev - m_new)
    p = jnp.exp(s - m_new)
    l_sc[...] = alpha * l_sc[...] + jnp.sum(p, axis=-1, keepdims=True)
    acc_sc[...] = alpha * acc_sc[...] + jnp.dot(
        p.astype(jnp.bfloat16), v, preferred_element_type=jnp.float32)
    m_sc[...] = m_new
    # TODO(synk): no causal mask, matching the original PyTorch module exactly.

    @pl.when(t == pl.num_programs(2) - 1)
    def _():
        inv_l = pl.reciprocal(l_sc[...], approx=True)
        o_ref[0, 0] = (acc_sc[...] * inv_l).astype(o_ref.dtype)


def attention_core(q4, k4, v4, *, n_rep, scale, kv_tile=512):
    B, nh, S, hd = q4.shape
    _, nkv, T, _ = k4.shape
    tk = _pick_tile(T, kv_tile)
    grid = (B, nh, T // tk)
    # TODO(synk): for very long prefill S, also tile the query rows (extra
    # parallel grid axis) so the (S, hd) Q block stays small.
    return pl.pallas_call(
        functools.partial(_flash_attn_kernel, scale=scale),
        out_shape=jax.ShapeDtypeStruct((B, nh, S, hd), jnp.bfloat16),
        grid=grid,
        in_specs=[pl.BlockSpec((1, 1, S, hd), lambda b, h, t: (b, h, 0, 0)),
                  pl.BlockSpec((1, 1, tk, hd),
                               lambda b, h, t: (b, h // n_rep, t, 0)),
                  pl.BlockSpec((1, 1, tk, hd),
                               lambda b, h, t: (b, h // n_rep, t, 0))],
        out_specs=pl.BlockSpec((1, 1, S, hd), lambda b, h, t: (b, h, 0, 0)),
        scratch_shapes=[pltpu.VMEM((S, 1), jnp.float32),
                        pltpu.VMEM((S, 1), jnp.float32),
                        pltpu.VMEM((S, hd), jnp.float32)],
        compiler_params=pltpu.CompilerParams(
            dimension_semantics=("parallel", "parallel", "arbitrary"),
            vmem_limit_bytes=_VMEM_LIMIT),
    )(q4, k4, v4)


# ============ kernel (3): wo-proj + residual + RMSNorm + SwiGLU + residual ====

def _out_ffn_kernel(attn_ref, wo_ref, x_ref, nw_ref, w1_ref, w3_ref, w2_ref,
                    o_ref, h_sc, hn_sc, acc_sc, *, eps):
    j = pl.program_id(1)   # FFN hidden-dim reduction axis (innermost)

    @pl.when(j == 0)
    def _():
        h = x_ref[...] + jnp.dot(attn_ref[...], wo_ref[...],
                                 preferred_element_type=jnp.float32)
        h_sc[...] = h
        ms = jnp.mean(h * h, axis=-1, keepdims=True)
        hn_sc[...] = (h * lax.rsqrt(ms + eps) * nw_ref[...]).astype(jnp.bfloat16)
        acc_sc[...] = jnp.zeros_like(acc_sc)

    hn = hn_sc[...]
    h1 = jnp.dot(hn, w1_ref[...], preferred_element_type=jnp.float32)   # (tm, th)
    h3 = jnp.dot(hn, w3_ref[...], preferred_element_type=jnp.float32)
    g = (h1 * jax.nn.sigmoid(h1)) * h3                                  # SiLU*gate f32
    acc_sc[...] += jnp.dot(g.astype(jnp.bfloat16), w2_ref[...],
                           preferred_element_type=jnp.float32)

    @pl.when(j == pl.num_programs(1) - 1)
    def _():
        o_ref[...] = (h_sc[...] + acc_sc[...]).astype(o_ref.dtype)


def fused_out_proj_ffn(attn2d, wo, x2d, norm_w, w1, w3, w2, eps, *,
                       row_tile=256, ffn_tile=512):
    M, Nq = attn2d.shape
    D = x2d.shape[1]
    Hf = w1.shape[1]
    tm = _pick_tile(M, row_tile)
    th = _pick_tile(Hf, ffn_tile)
    grid = (M // tm, Hf // th)
    # TODO(synk): at real D=4096 the resident wo (Nq, D) also needs its own
    # contraction tiling; here it fits VMEM comfortably.
    return pl.pallas_call(
        functools.partial(_out_ffn_kernel, eps=eps),
        out_shape=jax.ShapeDtypeStruct((M, D), jnp.float32),
        grid=grid,
        in_specs=[pl.BlockSpec((tm, Nq), lambda i, j: (i, 0)),
                  pl.BlockSpec((Nq, D), lambda i, j: (0, 0)),
                  pl.BlockSpec((tm, D), lambda i, j: (i, 0)),
                  pl.BlockSpec((1, D), lambda i, j: (0, 0)),
                  pl.BlockSpec((D, th), lambda i, j: (0, j)),
                  pl.BlockSpec((D, th), lambda i, j: (0, j)),
                  pl.BlockSpec((th, D), lambda i, j: (j, 0))],
        out_specs=pl.BlockSpec((tm, D), lambda i, j: (i, 0)),
        scratch_shapes=[pltpu.VMEM((tm, D), jnp.float32),    # h (residual)
                        pltpu.VMEM((tm, D), jnp.bfloat16),   # RMSNorm(h)
                        pltpu.VMEM((tm, D), jnp.float32)],   # FFN accumulator
        compiler_params=pltpu.CompilerParams(
            dimension_semantics=("parallel", "arbitrary"),
            vmem_limit_bytes=_VMEM_LIMIT),
    )(attn2d, wo, x2d, norm_w.reshape(1, D), w1, w3, w2)


# ============================ wrapper / glue (JAX) ============================

def _deinterleave_heads(w, n_heads, hd):
    """Permute output columns of a (D, n_heads*hd) projection to
    [all heads' even (real) comps | all heads' odd (imag) comps]."""
    D = w.shape[0]
    w4 = w.reshape(D, n_heads, hd // 2, 2)
    return jnp.concatenate([w4[..., 0].reshape(D, -1),
                            w4[..., 1].reshape(D, -1)], axis=1)


def prepare_params(raw, cfg):
    """One-time weight prep: de-interleave Q/K columns for activation-side RoPE,
    concat into a single QKV matmul, cast matmul weights to bf16."""
    nh, nkv, hd = cfg["n_heads"], cfg["n_kv_heads"], cfg["head_dim"]
    wq = _deinterleave_heads(raw["wq"], nh, hd)
    wk = _deinterleave_heads(raw["wk"], nkv, hd)
    wqkv = jnp.concatenate([wq, wk, raw["wv"]], axis=1).astype(jnp.bfloat16)
    return dict(
        wqkv=wqkv,
        wo=raw["wo"].astype(jnp.bfloat16),
        w1=raw["w1"].astype(jnp.bfloat16),
        w3=raw["w3"].astype(jnp.bfloat16),
        w2=raw["w2"].astype(jnp.bfloat16),
        attn_norm_w=raw["attn_norm_w"].astype(jnp.float32),
        ffn_norm_w=raw["ffn_norm_w"].astype(jnp.float32),
    )


def encoder_block_forward(x, prepared, cache_k, cache_v, start_pos, cos, sin, cfg,
                          *, seq_tile=256, kv_tile=512, row_tile=256, ffn_tile=512):
    B, S, D = x.shape
    nh, nkv, hd = cfg["n_heads"], cfg["n_kv_heads"], cfg["head_dim"]
    hd2 = hd // 2
    Nq, Nk = nh * hd, nkv * hd
    n_rep = nh // nkv
    eps = cfg["norm_eps"]

    # (1) RMSNorm + QKV projection + RoPE (bf16 activations in/out)
    qkv = fused_qkv_rope(x.astype(jnp.bfloat16), prepared["attn_norm_w"],
                         prepared["wqkv"], cos, sin, eps,
                         nh=nh, nkv=nkv, hd=hd, seq_tile=seq_tile)

    # De-interleaved Q/K -> (B, heads, S, hd); per-head feature order is
    # [real | imag], identical for Q and K, so Q.K dot products (and hence the
    # attention output, which lives in V's untouched feature space) are exact.
    xq = (qkv[..., :Nq].reshape(B, S, 2, nh, hd2)
          .transpose(0, 3, 1, 2, 4).reshape(B, nh, S, hd))
    xk = (qkv[..., Nq:Nq + Nk].reshape(B, S, 2, nkv, hd2)
          .transpose(0, 3, 1, 2, 4).reshape(B, nkv, S, hd))
    xv = qkv[..., Nq + Nk:].reshape(B, S, nkv, hd).transpose(0, 2, 1, 3)

    # KV cache: bf16, kv-head-major (max_B, n_kv_heads, max_T, hd).
    # TODO(synk): alias the cache via input_output_aliases (or write it directly
    # from kernel (1)) instead of re-materializing it with dynamic_update_slice.
    cache_k = lax.dynamic_update_slice(cache_k, xk.astype(cache_k.dtype),
                                       (0, 0, start_pos, 0))
    cache_v = lax.dynamic_update_slice(cache_v, xv.astype(cache_v.dtype),
                                       (0, 0, start_pos, 0))
    T = start_pos + S
    keys = cache_k[:B, :, :T]
    values = cache_v[:B, :, :T]

    # (2) flash-style attention; GQA kv-head selection happens in the index_map
    attn = attention_core(xq, keys, values, n_rep=n_rep,
                          scale=1.0 / math.sqrt(hd), kv_tile=kv_tile)
    attn2d = attn.transpose(0, 2, 1, 3).reshape(B * S, Nq)

    # (3) wo projection + residual + RMSNorm + hidden-tiled SwiGLU + residual
    out2d = fused_out_proj_ffn(attn2d, prepared["wo"], x.reshape(B * S, D),
                               prepared["ffn_norm_w"], prepared["w1"],
                               prepared["w3"], prepared["w2"], eps,
                               row_tile=row_tile, ffn_tile=ffn_tile)
    return out2d.reshape(B, S, D), cache_k, cache_v


# --------------------------- pure-JAX f32 reference ---------------------------

def apply_rotary_embeddings(x, cos, sin):
    # x: (B, S, H, Hd); cos/sin: (S, Hd//2).  Interleaved (real, imag) pairs,
    # matching torch view_as_complex on reshape(..., -1, 2).
    xr = x[..., 0::2]
    xi = x[..., 1::2]
    c = cos[None, :, None, :]
    s = sin[None, :, None, :]
    out_r = xr * c - xi * s
    out_i = xr * s + xi * c
    return jnp.stack([out_r, out_i], axis=-1).reshape(x.shape)


def reference_forward(x, params, start_pos, cos, sin, cfg):
    B, S, D = x.shape
    nh, nkv, hd = cfg["n_heads"], cfg["n_kv_heads"], cfg["head_dim"]
    n_rep = nh // nkv
    eps = cfg["norm_eps"]

    def rms(y, w):
        inv = lax.rsqrt(jnp.mean(y * y, axis=-1, keepdims=True) + eps)
        return y * inv * w

    xn = rms(x, params["attn_norm_w"])
    xq = (xn @ params["wq"]).reshape(B, S, nh, hd)
    xk = (xn @ params["wk"]).reshape(B, S, nkv, hd)
    xv = (xn @ params["wv"]).reshape(B, S, nkv, hd)
    xq = apply_rotary_embeddings(xq, cos, sin)
    xk = apply_rotary_embeddings(xk, cos, sin)
    keys = jnp.repeat(xk, n_rep, axis=2)
    values = jnp.repeat(xv, n_rep, axis=2)
    q = jnp.transpose(xq, (0, 2, 1, 3))
    k = jnp.transpose(keys, (0, 2, 1, 3))
    v = jnp.transpose(values, (0, 2, 1, 3))
    s = jnp.einsum("bhqd,bhkd->bhqk", q, k) / math.sqrt(hd)
    p = jax.nn.softmax(s, axis=-1)
    o = jnp.einsum("bhqk,bhkd->bhqd", p, v)
    o = jnp.transpose(o, (0, 2, 1, 3)).reshape(B, S, nh * hd)
    h = x + o @ params["wo"]

    hn = rms(h, params["ffn_norm_w"])
    h1 = hn @ params["w1"]
    swish = h1 * jax.nn.sigmoid(h1)
    ff = (swish * (hn @ params["w3"])) @ params["w2"]
    return h + ff


# ----------------------------------- main ------------------------------------

if __name__ == "__main__":
    cfg = dict(
        dim=64,
        n_heads=4,
        n_kv_heads=2,
        head_dim=16,
        hidden_dim=int(2 * int(4 * 64)),   # 512, as in FeedForward.__init__
        norm_eps=1e-5,
        max_batch_size=4,
        max_seq_len=32,
    )
    B, S, D = 2, 16, cfg["dim"]
    start_pos = 0

    key = jax.random.PRNGKey(0)
    ks = jax.random.split(key, 10)
    init = lambda k, shp: (0.02 * jax.random.normal(k, shp)).astype(jnp.float32)

    params = {
        "wq": init(ks[0], (D, cfg["n_heads"] * cfg["head_dim"])),
        "wk": init(ks[1], (D, cfg["n_kv_heads"] * cfg["head_dim"])),
        "wv": init(ks[2], (D, cfg["n_kv_heads"] * cfg["head_dim"])),
        "wo": init(ks[3], (cfg["n_heads"] * cfg["head_dim"], D)),
        "w1": init(ks[4], (D, cfg["hidden_dim"])),
        "w3": init(ks[5], (D, cfg["hidden_dim"])),
        "w2": init(ks[6], (cfg["hidden_dim"], D)),
        # torch RMSNorm init is zeros; use non-trivial weights for a real test
        "attn_norm_w": (1.0 + 0.1 * jax.random.normal(ks[7], (D,))).astype(jnp.float32),
        "ffn_norm_w": (1.0 + 0.1 * jax.random.normal(ks[8], (D,))).astype(jnp.float32),
    }

    x = jax.random.normal(ks[9], (B, S, D), dtype=jnp.float32)

    # rotary frequencies (standard Llama): theta_i = 10000^(-2i/hd)
    half = cfg["head_dim"] // 2
    inv_freq = 1.0 / (10000.0 ** (jnp.arange(0, half, dtype=jnp.float32) * 2.0
                                  / cfg["head_dim"]))
    pos = jnp.arange(S, dtype=jnp.float32)
    freqs = jnp.outer(pos, inv_freq)                 # (S, hd/2)
    cos, sin = jnp.cos(freqs), jnp.sin(freqs)

    prepared = prepare_params(params, cfg)
    cache_k = jnp.zeros((cfg["max_batch_size"], cfg["n_kv_heads"],
                         cfg["max_seq_len"], cfg["head_dim"]), jnp.bfloat16)
    cache_v = jnp.zeros_like(cache_k)

    # Small tile targets here so the toy run exercises both reduction axes
    # (2 kv tiles in attention, 2 hidden tiles in the FFN); real sizes use the
    # 256/512 defaults.
    out, cache_k, cache_v = encoder_block_forward(
        x, prepared, cache_k, cache_v, start_pos, cos, sin, cfg,
        seq_tile=256, kv_tile=8, row_tile=256, ffn_tile=256)
    out = jax.block_until_ready(out)

    ref = jax.block_until_ready(
        reference_forward(x, params, start_pos, cos, sin, cfg))

    assert out.shape == (B, S, D)
    np.testing.assert_allclose(np.asarray(out), np.asarray(ref),
                               rtol=2e-2, atol=2e-2)
    print("KERNEL_OK")
</pallas_src>

<mosaic_0001>
module attributes {stable_mosaic.version = 11 : i64} {
  func.func @_qkv_rope_kernel(%arg0: i32, %arg1: i32, %arg2: memref<1x16x64xbf16, #tpu.memory_space<vmem>>, %arg3: memref<1x64xf32, #tpu.memory_space<vmem>>, %arg4: memref<64x128xbf16, #tpu.memory_space<vmem>>, %arg5: memref<16x8xf32, #tpu.memory_space<vmem>>, %arg6: memref<16x8xf32, #tpu.memory_space<vmem>>, %arg7: memref<1x16x128xbf16, #tpu.memory_space<vmem>>) attributes {dimension_semantics = [#tpu.dimension_semantics<parallel>, #tpu.dimension_semantics<parallel>], iteration_bounds = array<i64: 2, 1>, scalar_prefetch = 0 : i64, scratch_operands = 0 : i64, tpu.core_type = #tpu.core_type<tc>, window_params = [{transform_indices = @transform_0, window_bounds = array<i64: 1, 16, 64>}, {pipeline_mode = #tpu.pipeline_mode<synchronous>, transform_indices = @transform_1, window_bounds = array<i64: 1, 64>}, {pipeline_mode = #tpu.pipeline_mode<synchronous>, transform_indices = @transform_2, window_bounds = array<i64: 64, 128>}, {transform_indices = @transform_3, window_bounds = array<i64: 16, 8>}, {transform_indices = @transform_4, window_bounds = array<i64: 16, 8>}, {transform_indices = @transform_5, window_bounds = array<i64: 1, 16, 128>}]} {
    %c0 = arith.constant 0 : index
    %c0_0 = arith.constant 0 : index
    %c0_1 = arith.constant 0 : index
    %0 = vector.load %arg2[%c0, %c0_0, %c0_1] : memref<1x16x64xbf16, #tpu.memory_space<vmem>>, vector<1x16x64xbf16>
    %1 = vector.shape_cast %0 : vector<1x16x64xbf16> to vector<16x64xbf16>
    %2 = arith.extf %1 : vector<16x64xbf16> to vector<16x64xf32>
    %3 = arith.mulf %2, %2 : vector<16x64xf32>
    %cst = arith.constant dense<0.000000e+00> : vector<16xf32>
    %4 = vector.multi_reduction <add>, %3, %cst [1] : vector<16x64xf32> to vector<16xf32>
    %5 = vector.shape_cast %4 : vector<16xf32> to vector<16x1xf32>
    %cst_2 = arith.constant 6.400000e+01 : f32
    %6 = vector.broadcast %cst_2 : f32 to vector<16x1xf32>
    %7 = arith.divf %5, %6 : vector<16x1xf32>
    %cst_3 = arith.constant 9.99999974E-6 : f32
    %8 = vector.broadcast %cst_3 : f32 to vector<16x1xf32>
    %9 = arith.addf %7, %8 : vector<16x1xf32>
    %10 = math.rsqrt %9 : vector<16x1xf32>
    %11 = vector.broadcast %10 : vector<16x1xf32> to vector<16x64xf32>
    %12 = arith.mulf %2, %11 : vector<16x64xf32>
    %c0_4 = arith.constant 0 : index
    %c0_5 = arith.constant 0 : index
    %13 = vector.load %arg3[%c0_4, %c0_5] : memref<1x64xf32, #tpu.memory_space<vmem>>, vector<1x64xf32>
    %14 = vector.broadcast %13 : vector<1x64xf32> to vector<16x64xf32>
    %15 = arith.mulf %12, %14 : vector<16x64xf32>
    %16 = arith.truncf %15 : vector<16x64xf32> to vector<16x64xbf16>
    %c0_6 = arith.constant 0 : index
    %c0_7 = arith.constant 0 : index
    %17 = vector.load %arg4[%c0_6, %c0_7] : memref<64x128xbf16, #tpu.memory_space<vmem>>, vector<64x128xbf16>
    %cst_8 = arith.constant dense<0.000000e+00> : vector<16x128xf32>
    %18 = tpu.matmul %16, %17, %cst_8 {dimension_numbers = #tpu.dot_dimension_numbers<[1], [0], [0], [1], [0, 0, 1, 1], [], []>} : vector<16x64xbf16>, vector<64x128xbf16>, vector<16x128xf32> -> vector<16x128xf32>
    %19 = vector.extract_strided_slice %18 {offsets = [0, 0], sizes = [16, 64], strides = [1, 1]} : vector<16x128xf32> to vector<16x64xf32>
    %20 = vector.extract_strided_slice %18 {offsets = [0, 64], sizes = [16, 32], strides = [1, 1]} : vector<16x128xf32> to vector<16x32xf32>
    %21 = vector.extract_strided_slice %18 {offsets = [0, 96], sizes = [16, 32], strides = [1, 1]} : vector<16x128xf32> to vector<16x32xf32>
    %c0_9 = arith.constant 0 : index
    %c0_10 = arith.constant 0 : index
    %22 = vector.load %arg5[%c0_9, %c0_10] : memref<16x8xf32, #tpu.memory_space<vmem>>, vector<16x8xf32>
    %c0_11 = arith.constant 0 : index
    %c0_12 = arith.constant 0 : index
    %23 = vector.load %arg6[%c0_11, %c0_12] : memref<16x8xf32, #tpu.memory_space<vmem>>, vector<16x8xf32>
    %cst_13 = arith.constant 0.000000e+00 : f32
    %24 = vector.broadcast %cst_13 : f32 to vector<16x8xf32>
    %25 = arith.subf %24, %23 : vector<16x8xf32>
    %26 = tpu.concatenate %22, %22, %22, %22, %22, %22, %22, %22 in 1 : vector<16x8xf32>, vector<16x8xf32>, vector<16x8xf32>, vector<16x8xf32>, vector<16x8xf32>, vector<16x8xf32>, vector<16x8xf32>, vector<16x8xf32> -> vector<16x64xf32>
    %27 = tpu.concatenate %25, %25, %25, %25, %23, %23, %23, %23 in 1 : vector<16x8xf32>, vector<16x8xf32>, vector<16x8xf32>, vector<16x8xf32>, vector<16x8xf32>, vector<16x8xf32>, vector<16x8xf32>, vector<16x8xf32> -> vector<16x64xf32>
    %28 = tpu.concatenate %22, %22, %22, %22 in 1 : vector<16x8xf32>, vector<16x8xf32>, vector<16x8xf32>, vector<16x8xf32> -> vector<16x32xf32>
    %29 = tpu.concatenate %25, %25, %23, %23 in 1 : vector<16x8xf32>, vector<16x8xf32>, vector<16x8xf32>, vector<16x8xf32> -> vector<16x32xf32>
    %30 = arith.mulf %19, %26 : vector<16x64xf32>
    %31 = vector.extract_strided_slice %19 {offsets = [0, 32], sizes = [16, 32], strides = [1, 1]} : vector<16x64xf32> to vector<16x32xf32>
    %32 = vector.extract_strided_slice %19 {offsets = [0, 0], sizes = [16, 32], strides = [1, 1]} : vector<16x64xf32> to vector<16x32xf32>
    %33 = tpu.concatenate %31, %32 in 1 : vector<16x32xf32>, vector<16x32xf32> -> vector<16x64xf32>
    %34 = arith.mulf %33, %27 : vector<16x64xf32>
    %35 = arith.addf %30, %34 : vector<16x64xf32>
    %36 = arith.mulf %20, %28 : vector<16x32xf32>
    %37 = vector.extract_strided_slice %20 {offsets = [0, 16], sizes = [16, 16], strides = [1, 1]} : vector<16x32xf32> to vector<16x16xf32>
    %38 = vector.extract_strided_slice %20 {offsets = [0, 0], sizes = [16, 16], strides = [1, 1]} : vector<16x32xf32> to vector<16x16xf32>
    %39 = tpu.concatenate %37, %38 in 1 : vector<16x16xf32>, vector<16x16xf32> -> vector<16x32xf32>
    %40 = arith.mulf %39, %29 : vector<16x32xf32>
    %41 = arith.addf %36, %40 : vector<16x32xf32>
    %42 = tpu.concatenate %35, %41, %21 in 1 : vector<16x64xf32>, vector<16x32xf32>, vector<16x32xf32> -> vector<16x128xf32>
    %43 = arith.truncf %42 : vector<16x128xf32> to vector<16x128xbf16>
    %c0_14 = arith.constant 0 : index
    %c0_15 = arith.constant 0 : index
    %c0_16 = arith.constant 0 : index
    %44 = vector.load %arg7[%c0_14, %c0_15, %c0_16] : memref<1x16x128xbf16, #tpu.memory_space<vmem>>, vector<1x16x128xbf16>
    %45 = vector.shape_cast %44 : vector<1x16x128xbf16> to vector<16x128xbf16>
    %46 = vector.shape_cast %43 : vector<16x128xbf16> to vector<1x16x128xbf16>
    tpu.vector_store %arg7[%c0_14, %c0_15, %c0_16], %46 {strides = array<i32>} : memref<1x16x128xbf16, #tpu.memory_space<vmem>>, vector<1x16x128xbf16>,
    return
  }
  func.func @transform_0(%arg0: i32, %arg1: i32) -> (i32, i32, i32) {
    %c0_i32 = arith.constant 0 : i32
    %c0_i32_0 = arith.constant 0 : i32
    return %arg0, %arg1, %c0_i32 : i32, i32, i32
  }
  func.func @transform_1(%arg0: i32, %arg1: i32) -> (i32, i32) {
    %c0_i32 = arith.constant 0 : i32
    %c0_i32_0 = arith.constant 0 : i32
    %c0_i32_1 = arith.constant 0 : i32
    return %c0_i32, %c0_i32_0 : i32, i32
  }
  func.func @transform_2(%arg0: i32, %arg1: i32) -> (i32, i32) {
    %c0_i32 = arith.constant 0 : i32
    %c0_i32_0 = arith.constant 0 : i32
    %c0_i32_1 = arith.constant 0 : i32
    return %c0_i32, %c0_i32_0 : i32, i32
  }
  func.func @transform_3(%arg0: i32, %arg1: i32) -> (i32, i32) {
    %c0_i32 = arith.constant 0 : i32
    %c0_i32_0 = arith.constant 0 : i32
    return %arg1, %c0_i32 : i32, i32
  }
  func.func @transform_4(%arg0: i32, %arg1: i32) -> (i32, i32) {
    %c0_i32 = arith.constant 0 : i32
    %c0_i32_0 = arith.constant 0 : i32
    return %arg1, %c0_i32 : i32, i32
  }
  func.func @transform_5(%arg0: i32, %arg1: i32) -> (i32, i32, i32) {
    %c0_i32 = arith.constant 0 : i32
    %c0_i32_0 = arith.constant 0 : i32
    return %arg0, %arg1, %c0_i32 : i32, i32, i32
  }
}

</mosaic_0001>

<bundles_post_ra>
// kernel: tpu_custom_call.1
= control target key start
LH: loop header
LB: loop body
LE: loop exit
PB: predicated region body
PF: predicated region fallthrough
CT: control target
= control target key end

     0   :  { %s1727_s0 = inlined_call_operand.hbm [shape: bf16[2,16,64], index: 0, kind: input, shape index: {}]   ;;  %s1728_s1 = inlined_call_operand.hbm [shape: f32[1,64], index: 1, kind: input, shape index: {}]   ;;  %s1729_s2 = inlined_call_operand.hbm [shape: bf16[64,128], index: 2, kind: input, shape index: {}]   ;;  %s1730_s3 = inlined_call_operand.hbm [shape: f32[16,8], index: 3, kind: input, shape index: {}]   ;;  %s1731_s4 = inlined_call_operand.hbm [shape: f32[16,8], index: 4, kind: input, shape index: {}]   ;;  %s1732_s5 = inlined_call_operand.hbm [shape: bf16[2,16,128], index: 5, kind: output, shape index: {}]  }
   0x1   :  { %1739 = sst [smem:[#allocation16_spill]] %s1728_s1 }
   0x2   :  { %1740 = sst [smem:[#allocation17_spill]] %s1730_s3 }
   0x3   :  { %10 = vsyncpa [#allocation3], 0 }
   0x4   :  { %12 = vsyncpa [#allocation3 + $0x1], 0 }
   0x5   :  { %13 = vsyncpa [#allocation6], 0 }
   0x6   :  { %14 = vsyncpa [#allocation9], 0 }
   0x7   :  { %15 = vsyncpa [#allocation4], 0 }
   0x8   :  { %17 = vsyncpa [#allocation4 + $0x1], 0  ;;  %s1287_s18 = smov 0   ;;  %s1289_s19 = smov 0  }
   0x9   :  { %s1291_s20 = smov 0   ;;  %s1293_s21 = smov 0  }
   0xa   :  { %s1295_s22 = smov 0   ;;  %s1297_s23 = smov 0  }
   0xb LB: > { %s811_s24 = sadd.s32 4294967295, %s1232_s23   ;;  %s812_s25 = sadd.s32 4294967294, %s1232_s23   ;;  %s1232_s23 = sphi %s1297_s23, %s23_s23   ;;  %s1228_s22 = sphi %s1295_s22, %s1764_s22   ;;  %s1224_s21 = sphi %s1293_s21, %s1763_s21   ;;  %s1220_s20 = sphi %s1291_s20, %s1762_s20   ;;  %s1216_s19 = sphi %s1289_s19, %s1761_s19   ;;  %s1212_s18 = sphi %s1287_s18, %s1760_s18  }
   0xc   : > { %p57_p0 = scmp.ne.s32.totalorder %s1216_s19, %s1212_s18  ;;  %p1321_p1 = scmp.eq.s32.totalorder %s811_s24, 0 }
   0xd   : > { %p1325_p2 = scmp.eq.s32.totalorder %s811_s24, 1  ;;  %p183_p3 = scmp.eq.s32.totalorder %s812_s25, 1 }
   0xe   : > { %s1741_s26 = scalar_select %p1321_p1, 1, 0 }
   0xf   : > { %s1742_s27 = scalar_select %p1325_p2, 1, 0 }
  0x10   : > { %p1331_p4 = por %p1321_p1, %p57_p0  ;;  %p813_p5 = scmp.ge.s32.totalorder %s1232_s23, 1 }
  0x11   : > { %p1336_p6 = por %p183_p3, %p57_p0  ;;  %p190_p7 = scmp.lt.s32.totalorder %s1232_s23, 3 }
  0x12   : > { %s1743_s28 = scalar_select %p1331_p4, 1, 0 }
  0x13   : > { %s1744_s29 = scalar_select %p1336_p6, 1, 0 }
  0x14   : > { %p1341_p8 = pnand %p813_p5, %p190_p7  ;;  %s1234_s6 = smov [#allocation5]  }
  0x15   : > { %s203_s7 = sshll.u32 %s1234_s6, 4  ;;  %s1235_s8 = smov [#allocation8]   ;;  %s204_s7 = int_to_ptr.vmem [resolvable:$true] %s203_s7 }
  0x16   : > { %s1745_s30 = scalar_select %p1341_p8, 1, 0 }
  0x17   : > { %p892_p10 = pneg %p1341_p8  ;;  %s229_s9 = sshll.u32 %s1235_s8, 4  ;;  %s1354_s9 = int_to_ptr.vmem [resolvable:$true] %s229_s9 }
  0x18   : > { %s1236_s11 = smov [#allocation7]   ;;  %s1747_s1 = sld [smem:[#allocation16_spill]] }
  0x19   : > { %p1350_p11 = pnand %p892_p10, %p1321_p1  ;;  %s1356_s12 = sshll.u32 %s1236_s11, 4  ;;  %s214_s12 = int_to_ptr.vmem [resolvable:$true] %s1356_s12 }
  0x1b   : > { %p1366_p13 = pneg %p1350_p11 }
  0x1e   : > { %s1000_s15 = scalar_lea.hbm %s1747_s1, 16 }
  0x1f   : > { %p1001_p12 = scmp.ne.s32.totalorder %s1747_s1, %s1000_s15  ;;  %p1007_p5 = scmp.lt.u32.totalorder %s1000_s15, %s1747_s1 }
  0x21   : > { %p1003_p0 = pnand %p1366_p13, %p1001_p12 }
  0x23   : > { %p1004_p3 = pneg %p1003_p0 }
  0x25   : > { %p1009_p7 = pnand %p1007_p5, %p1004_p3 }
  0x27   : > { %1012 = shalt.err (!%p1009_p7)
}
  0x28   : > { %s1013_s8 = scalar_lea.vmem %s204_s7, 16  ;;  %s1020_s11 = scalar_lea.vmem %s204_s7, 32 }
  0x29   : > { %p1014_p10 = scmp.ne.s32.totalorder %s204_s7, %s1013_s8  ;;  %p1021_p1 = scmp.lt.s32.totalorder %s204_s7, %s204_s7 }
  0x2a   : > { %p1022_p4 = scmp.lt.s32.totalorder %s1020_s11, %s1013_s8 }
  0x2b   : > { %p1016_p9 = pnand %p1014_p10, %p1366_p13 }
  0x2c   : > { %p1023_p8 = por %p1022_p4, %p1021_p1 }
  0x2d   : > { %p1017_p6 = pneg %p1016_p9 }
  0x2f   : > { %p1024_p2 = pnand %p1023_p8, %p1017_p6 }
  0x31   : > { %1027 = shalt.err (!%p1024_p2)
}
  0x32   : > { %895 = dma.hbm_to_vmem [thread:$0]  (!%p1350_p11), %s1747_s1, 16, %s204_s7, [#allocation6]  }
  0x33   : > { %s1749_s3 = sld [smem:[#allocation17_spill]] }
  0x39   : > { %s1028_s17 = scalar_lea.hbm %s1749_s3, 256 }
  0x3a   : > { %p1029_p9 = scmp.ne.s32.totalorder %s1749_s3, %s1028_s17  ;;  %p1035_p2 = scmp.lt.u32.totalorder %s1028_s17, %s1749_s3 }
  0x3c   : > { %p1031_p12 = pnand %p1029_p9, %p1366_p13 }
  0x3e   : > { %p1032_p1 = pneg %p1031_p12 }
  0x40   : > { %p1037_p4 = pnand %p1035_p2, %p1032_p1 }
  0x42   : > { %1040 = shalt.err (!%p1037_p4)
}
  0x43   : > { %s1041_s7 = scalar_lea.vmem %s1354_s9, 256  ;;  %p1049_p3 = scmp.lt.s32.totalorder %s1354_s9, %s1354_s9 }
  0x44   : > { %p1042_p6 = scmp.ne.s32.totalorder %s1354_s9, %s1041_s7  ;;  %p1050_p5 = scmp.lt.s32.totalorder %s1041_s7, %s1041_s7 }
  0x46   : > { %p1044_p8 = pnand %p1042_p6, %p1366_p13  ;;  %p1051_p7 = por %p1050_p5, %p1049_p3 }
  0x48   : > { %p1045_p0 = pneg %p1044_p8 }
  0x4a   : > { %p1052_p10 = pnand %p1051_p7, %p1045_p0 }
  0x4c   : > { %1055 = shalt.err (!%p1052_p10)
}
  0x4d   : > { %s1737_s13 = smov 128   ;;  %s1738_s14 = smov 8  }
  0x4e   : > { %901 = dma.hbm_to_vmem [thread:$0]  (!%p1350_p11), %s1749_s3, 256, %s1354_s9, [#allocation9], %s1737_s13, %s1737_s13, %s1738_s14  }
  0x4f   : > { %s1056_s6 = scalar_lea.hbm %s1729_s2, 512 }
  0x50   : > { %p1057_p9 = scmp.ne.s32.totalorder %s1729_s2, %s1056_s6  ;;  %p1063_p2 = scmp.lt.u32.totalorder %s1056_s6, %s1729_s2 }
  0x52   : > { %p1059_p12 = pnand %p1057_p9, %p1366_p13 }
  0x54   : > { %p1060_p1 = pneg %p1059_p12 }
  0x56   : > { %p1065_p4 = pnand %p1063_p2, %p1060_p1 }
  0x58   : > { %1068 = shalt.err (!%p1065_p4)
}
  0x59   : > { %s1069_s15 = scalar_lea.vmem %s214_s12, 512  ;;  %p1077_p3 = scmp.lt.s32.totalorder %s214_s12, %s214_s12 }
  0x5a   : > { %p1070_p6 = scmp.ne.s32.totalorder %s214_s12, %s1069_s15  ;;  %p1078_p5 = scmp.lt.s32.totalorder %s1069_s15, %s1069_s15 }
  0x5c   : > { %p1072_p8 = pnand %p1070_p6, %p1366_p13  ;;  %p1079_p7 = por %p1078_p5, %p1077_p3 }
  0x5e   : > { %p1073_p0 = pneg %p1072_p8 }
  0x60   : > { %p1080_p10 = pnand %p1079_p7, %p1073_p0 }
  0x62   : > { %1083 = shalt.err (!%p1080_p10)
}
  0x63   : > { %s1239_s9 = smov 64   ;;  %s1240_s16 = smov 4  }
  0x64   : > { %898 = dma.hbm_to_vmem [thread:$0]  (!%p1350_p11), %s1729_s2, 512, %s214_s12, [#allocation6], %s1239_s9, %s1239_s9, %s1240_s16  }
  0x65   : > { %s1241_s25 = smov [#allocation10]   ;;  %s1084_s7 = scalar_lea.hbm %s1731_s4, 256 }
  0x66   : > { %s245_s6 = sshll.u32 %s1241_s25, 4  ;;  %p1085_p9 = scmp.ne.s32.totalorder %s1731_s4, %s1084_s7  ;;  %s246_s6 = int_to_ptr.vmem [resolvable:$true] %s245_s6 }
  0x67   : > { %p1091_p2 = scmp.lt.u32.totalorder %s1084_s7, %s1731_s4 }
  0x68   : > { %p1087_p12 = pnand %p1085_p9, %p1366_p13 }
  0x6a   : > { %p1088_p1 = pneg %p1087_p12 }
  0x6c   : > { %p1093_p4 = pnand %p1091_p2, %p1088_p1 }
  0x6e   : > { %1096 = shalt.err (!%p1093_p4)
}
  0x6f   : > { %s1097_s12 = scalar_lea.vmem %s246_s6, 256  ;;  %p1105_p3 = scmp.lt.s32.totalorder %s246_s6, %s246_s6 }
  0x70   : > { %p1098_p6 = scmp.ne.s32.totalorder %s246_s6, %s1097_s12  ;;  %p1106_p5 = scmp.lt.s32.totalorder %s1097_s12, %s1097_s12 }
  0x72   : > { %p1100_p8 = pnand %p1098_p6, %p1366_p13  ;;  %p1107_p7 = por %p1106_p5, %p1105_p3 }
  0x74   : > { %p1101_p0 = pneg %p1100_p8 }
  0x76   : > { %p1108_p10 = pnand %p1107_p7, %p1101_p0 }
  0x78   : > { %1111 = shalt.err (!%p1108_p10)
}
  0x79   : > { %s1750_s13 = smov 8   ;;  %s1751_s1 = smov 128  }
  0x7a   : > { %904 = dma.hbm_to_vmem [thread:$0]  (!%p1350_p11), %s1731_s4, 256, %s246_s6, [#allocation9], %s1751_s1, %s1751_s1, %s1750_s13  }
  0x7b   : > { %s35_s24 = sadd.s32 1, %s1228_s22  ;;  %s44_s10 = sadd.s32 1, %s1220_s20 }
  0x7c   : > { %p37_p13 = scmp.ge.s32.totalorder %s35_s24, 2  ;;  %p51_p9 = scmp.ne.s32.totalorder %s1220_s20, %s1216_s19 }
  0x7d   : > { %p52_p12 = scmp.eq.s32.totalorder %s1232_s23, 0  ;;  %p917_p1 = scmp.lt.s32.totalorder %s1232_s23, 2 }
  0x7e   : > { %s1766_s24 = smov (%p37_p13, %s35_s24), 0  ;;  %p1752_p4 = scmp.ne.s32.totalorder %s1742_s27, 0 }
  0x7f   : > { %p53_p2 = por %p52_p12, %p51_p9  ;;  %s39_s25 = ssub.s32 %s1228_s22, %s1766_s24 }
  0x80   : > { %p1461_p6 = por %p1752_p4, %p51_p9  ;;  %s259_s8 = sand.u32 1, %s1220_s20  }
  0x81   : > { %p42_p8 = scmp.eq.s32.totalorder %s39_s25, 0  ;;  %s819_s6 = sshll.u32 %s259_s8, 3 }
  0x82   : > { %s842_s11 = sshll.u32 %s1228_s22, 7  ;;  %s263_s27 = scalar_lea.vmem [#allocation2], %s819_s6 }
  0x83   : > { %s1470_s7 = scalar_select %p42_p8, %s1220_s20, %s44_s10  }
  0x84   : > { %s1475_s13 = scalar_lea.hbm %s1727_s0, %s842_s11  ;;  %s272_s1 = sshll.u32 %s263_s27, 4  ;;  %s1483_s1 = int_to_ptr.vmem [resolvable:$true] %s272_s1 }
  0x85   : > { %p1479_p11 = pnand %p917_p1, %p53_p2  ;;  %s1485_s14 = scalar_lea.sflag [#allocation3], %s259_s8 }
  0x86   : > { %s1112_s10 = scalar_lea.hbm %s1475_s13, 128  ;;  %s1117_s11 = scalar_lea.hbm %s1727_s0, 256 }
  0x87   : > { %p1113_p0 = scmp.ne.s32.totalorder %s1475_s13, %s1112_s10  ;;  %p1114_p3 = pneg %p1479_p11 }
  0x88   : > { %p1118_p10 = scmp.lt.u32.totalorder %s1475_s13, %s1727_s0  ;;  %p1119_p13 = scmp.lt.u32.totalorder %s1117_s11, %s1112_s10 }
  0x89   : > { %p1115_p5 = pnand %p1114_p3, %p1113_p0  ;;  %p1121_p12 = scmp.lt.u32.totalorder %s1112_s10, %s1475_s13 }
  0x8a   : > { %p1120_p9 = por %p1119_p13, %p1118_p10 }
  0x8b   : > { %p1116_p7 = pneg %p1115_p5 }
  0x8c   : > { %p1122_p1 = por %p1121_p12, %p1120_p9 }
  0x8e   : > { %p1123_p2 = pnand %p1122_p1, %p1116_p7 }
  0x90   : > { %1126 = shalt.err (!%p1123_p2)
}
  0x91   : > { %s1127_s8 = scalar_lea.vmem %s1483_s1, 128  ;;  %s1242_s27 = smov [#allocation2]  }
  0x92   : > { %p1128_p4 = scmp.ne.s32.totalorder %s1483_s1, %s1127_s8  ;;  %s1132_s25 = sshll.u32 %s1242_s27, 4  ;;  %s1133_s25 = int_to_ptr.vmem [resolvable:$false] %s1132_s25 }
  0x93   : > { %s1134_s6 = scalar_lea.vmem %s1133_s25, 256  ;;  %p1135_p5 = scmp.lt.s32.totalorder %s1483_s1, %s1133_s25 }
  0x94   : > { %p1130_p8 = pnand %p1128_p4, %p1114_p3  ;;  %p1136_p10 = scmp.lt.s32.totalorder %s1134_s6, %s1127_s8 }
  0x96   : > { %p1131_p0 = pneg %p1130_p8  ;;  %p1137_p13 = por %p1136_p10, %p1135_p5 }
  0x98   : > { %p1138_p9 = pnand %p1137_p13, %p1131_p0 }
  0x9a   : > { %1141 = shalt.err (!%p1138_p9)
}
  0x9b   : > { %908 = dma.hbm_to_vmem [thread:$0]  (!%p1479_p11), %s1475_s13, 128, %s1483_s1, %s1485_s14, %s1239_s9, %s1239_s9, %s1240_s16  }
  0x9c   : > { %p1755_p3 = scmp.ne.s32.totalorder %s1745_s30, 0 }
  0x9d   : > { %s1519_s10 = sand.u32 (!%p1755_p3), 1, %s1216_s19   ;;  %p1756_p7 = scmp.ne.s32.totalorder (!%p1755_p3), %s1743_s28, 0 }
  0x9e   : > { %284 = sbr.rel (%p1755_p3) target bundleno = 816 (0x330), region = 40  ;;  %s823_s11 = sshll.u32 (!%p1755_p3), %s1519_s10, 3 }
  0x9f   : > { %s287_s15 = scalar_lea.sflag (!%p1755_p3), [#allocation3], %s1519_s10  ;;  %s290_s3 = scalar_lea.vmem (!%p1755_p3), [#allocation2], %s823_s11 }
  0xa5   : > { %1195 = dma.done.wait (%p1756_p7), %s287_s15, 128  }
  0xa6   : > { %1197 = vsyncadd (%p1756_p7), %s287_s15, 4294967168  ;;  %p1757_p11 = scmp.ne.s32.totalorder %s1741_s26, 0 }
  0xa8   : > { %1199 = dma.done.wait (%p1757_p11), [#allocation6], 528  }
  0xa9   : > { %1201 = vsyncadd (%p1757_p11), [#allocation6], 4294966768 }
  0xaa   : > { %1203 = dma.done.wait (%p1757_p11), [#allocation9], 512  }
  0xab   : > { %1205 = vsyncadd (%p1757_p11), [#allocation9], 4294966784  ;;  %v847_v0 = vld [vmem:[%s290_s3] sm:$0xff]   ;;  %vm344_vm0 = vcmask 523264   ;;  %v992_v7 = vld [vmem:[#allocation7] sm:$0xff]   ;;  %v1243_v8 = vmov 0.0  }
  0xac   : > { %v848_v1 = vunpack.c.l.bf16 %v847_v0  ;;  %v849_v2 = vunpack.c.h.bf16 %v847_v0  ;;  %860 = vmatprep.subr.bf16.mxu0 %v1243_v8  ;;  %vm1244_vm1 = vmmov 0   ;;  %v993_v9 = vld [vmem:[#allocation7 + $0x8] sm:$0xff]   ;;  %v994_v10 = vld [vmem:[#allocation7 + $0x10] sm:$0xff]   ;;  %v995_v11 = vld [vmem:[#allocation7 + $0x18] sm:$0xff]   ;;  %s1245_s26 = smov 8   ;;  %s1246_s28 = smov 24  }
  0xad   : > { %868 = vmatprep.mubr.msk.bf16.mxu0 %vm1244_vm1, %v1243_v8  ;;  %861 = vmatpush3.bf16.msra.mxu0 %v992_v7  ;;  %v1539_v12 = vld [vmem:[#allocation8] sm:$0xff]  ;;  %v1542_v13 = vld [vmem:[#allocation10] sm:$0xff]  ;;  %v1544_v14 = vld [vmem:[#allocation8 + $0x8] sm:$0xff]  ;;  %s1247_s30 = smov 16   ;;  %vm496_vm2 = vcmask 64512   ;;  %s1248_s9 = smov 48  }
  0xae   : > { %v342_v3 = vmul.f32 %v848_v1, %v848_v1  ;;  %v343_v4 = vmul.f32 %v849_v2, %v849_v2  ;;  %862 = vmatprep.subr.bf16.mxu0 %v1243_v8  ;;  %454 = vrot.lane.b32.xlu1 %v1539_v12, %s1245_s26  ;;  %v1546_v15 = vld [vmem:[#allocation10 + $0x8] sm:$0xff]  ;;  %v450_v16 = vsub.f32 0.0, %v1542_v13  ;;  %s1249_s16 = smov 80   ;;  %s1250_s13 = smov 32   ;;  %vm499_vm3 = vcmask 130048  }
  0xaf   : > { %v451_v17 = vsub.f32 0.0, %v1546_v15  ;;  %v829_v27 = vld [vmem:[#allocation5] ss:$0 sm:$0xff]  ;;  %s1251_s1 = smov 40   ;;  %s1252_s14 = smov 56   ;;  %vm502_vm4 = vcmask 195584  }
  0xb0   : > { %v345_v5 = vsel %vm344_vm0, %v342_v3, 0.0  ;;  %v348_v6 = vsel %vm344_vm0, %v343_v4, 0.0  ;;  %s1253_s12 = smov 96   ;;  %s1254_s8 = smov 64   ;;  %vm505_vm5 = vcmask 261120   ;;  %vm508_vm6 = vcmask 326656  }
  0xb1   : > { %346 = vadd.xlane.f32.xlu0 %v345_v5  ;;  %863 = vmatpush3.bf16.msra.mxu0 %v993_v9  ;;  %vm511_vm7 = vcmask 392192   ;;  %vm514_vm8 = vcmask 457728   ;;  %vm653_vm9 = vcmask 785408   ;;  %s845_s27 = sshll.u32 %s1224_s21, 7  ;;  %s332_s25 = scalar_lea.vmem [#allocation11], %s823_s11 }
  0xb2   : > { %864 = vmatprep.subr.bf16.mxu0 %v1243_v8  ;;  %456 = vrot.lane.b32.xlu1 %v1544_v14, %s1245_s26  ;;  %s682_s6 = sshll.u32 %s332_s25, 4  ;;  %s667_s21 = scalar_lea.sflag [#allocation4], %s1519_s10  ;;  %s1676_s6 = int_to_ptr.vmem [resolvable:$true] %s682_s6 }
  0xb3   : > { %s1142_s11 = scalar_lea.vmem %s1676_s6, 128 }
  0xb4   : > { %p1143_p12 = scmp.ne.s32.totalorder %s1676_s6, %s1142_s11 }
  0xb5   : > { %349 = vadd.xlane.f32.xlu0 %v348_v6  ;;  %865 = vmatpush3.bf16.msra.mxu0 %v994_v10 }
  0xb6   : > { %866 = vmatprep.subr.bf16.mxu0 %v1243_v8  ;;  %521 = vrot.lane.b32.xlu1 %v451_v17, %s1245_s26  ;;  %p1144_p1 = pnand %p1143_p12, %p1461_p6 }
  0xb8   : > { %p1145_p2 = pneg %p1144_p1 }
  0xb9   : > { %867 = vmatpush3.bf16.msra.mxu0 %v995_v11 }
  0xba   : > { %460 = vrot.lane.b32.xlu1 %v1539_v12, %s1247_s30 }
  0xbe   : > { %462 = vrot.lane.b32.xlu1 %v1544_v14, %s1247_s30 }
  0xc2   : > { %577 = vrot.lane.b32.xlu1 %v1542_v13, %s1247_s30 }
  0xc6   : > { %579 = vrot.lane.b32.xlu1 %v1546_v15, %s1247_s30 }
  0xca   : > { %466 = vrot.lane.b32.xlu1 %v1539_v12, %s1246_s28 }
  0xcb   : > { %519 = vrot.lane.b32.xlu0 %v450_v16, %s1245_s26  ;;  %s1674_s26 = scalar_lea.hbm %s1732_s5, %s845_s27 }
  0xce   : > { %583 = vrot.lane.b32.xlu1 %v1542_v13, %s1246_s28 }
  0xcf   : > { %468 = vrot.lane.b32.xlu0 %v1544_v14, %s1246_s28 }
  0xd3   : > { %585 = vrot.lane.b32.xlu0 %v1546_v15, %s1246_s28 }
 0x120   : > { %v455_v32 = vpop.permute.xlu1 %454 }
 0x121   : > { %v497_v49 = vsel %vm496_vm2, %v1539_v12, %v455_v32 }
 0x124   : > { %v457_v33 = vpop.permute.xlu1 %456 }
 0x125   : > { %v498_v45 = vsel %vm496_vm2, %v1544_v14, %v457_v33 }
 0x128   : > { %v522_v34 = vpop.permute.xlu1 %521 }
 0x129   : > { %v1569_v35 = vsel %vm496_vm2, %v451_v17, %v522_v34 }
 0x12c   : > { %v461_v42 = vpop.permute.xlu1 %460 }
 0x12d   : > { %v500_v51 = vsel %vm499_vm3, %v497_v49, %v461_v42 }
 0x130   : > { %v463_v43 = vpop.permute.xlu1 %462 }
 0x131   : > { %v501_v46 = vsel %vm499_vm3, %v498_v45, %v463_v43 }
 0x134   : > { %v578_v44 = vpop.permute.xlu1 %577 }
 0x138   : > { %v580_v48 = vpop.permute.xlu1 %579 }
 0x139   : > { %v590_v59 = vsel %vm499_vm3, %v1569_v35, %v580_v48 }
 0x13c   : > { %v467_v52 = vpop.permute.xlu1 %466 }
 0x13d   : > { %v503_v53 = vsel %vm502_vm4, %v500_v51, %v467_v52 }
 0x13e   : > { %v347_v18 = vpop.xlane.xlu0 %346 }
 0x13f   : > { %v352_v19 = vmul.f32 0.015625, %v347_v18 }
 0x140   : > { %v584_v54 = vpop.permute.xlu1 %583 }
 0x141   : > { %v354_v20 = vadd.f32 1e-05, %v352_v19 }
 0x142   : > { %v350_v21 = vpop.xlane.xlu0 %349 }
 0x143   : > { %996 = vrsqrt.f32 %v354_v20  ;;  %v353_v22 = vmul.f32 0.015625, %v350_v21 }
 0x145   : > { %v355_v23 = vadd.f32 1e-05, %v353_v22 }
 0x146   : > { %v520_v36 = vpop.permute.xlu0 %519 }
 0x147   : > { %998 = vrsqrt.f32 %v355_v23  ;;  %v1572_v37 = vsel %vm496_vm2, %v450_v16, %v520_v36 }
 0x148   : > { %v589_v57 = vsel %vm499_vm3, %v1572_v37, %v578_v44 }
 0x149   : > { %v591_v61 = vsel %vm502_vm4, %v589_v57, %v584_v54 }
 0x14a   : > { %v469_v47 = vpop.permute.xlu0 %468 }
 0x14b   : > { %v1612_v50 = vsel %vm502_vm4, %v501_v46, %v469_v47 }
 0x14d   : > { %v997_v24 = vpop.eup %996 }
 0x14e   : > { %v358_v25 = vmul.f32 %v997_v24, %v848_v1  ;;  %v586_v55 = vpop.permute.xlu0 %585 }
 0x14f   : > { %v592_v1 = vsel %vm502_vm4, %v590_v59, %v586_v55 }
 0x150   : > { %v367_v29 = vmul.f32 %v829_v27, %v358_v25 }
 0x151   : > { %v999_v26 = vpop.eup %998 }
 0x152   : > { %v359_v28 = vmul.f32 %v999_v26, %v849_v2 }
 0x154   : > { %v368_v30 = vmul.f32 %v829_v27, %v359_v28 }
 0x156   : > { %v369_v31 = vpack.c.bf16 %v368_v30, %v367_v29 }
 0x158   : > { %869 = vmatmul.mubr.msk.bf16.vlgmr.msra.gmra.mrb[0].mxu0 %vm344_vm0, %v369_v31 }
 0x22b   : > { %v1574_v38 = vpop.f32.mrb[0].mxu0 }
 0x22c   : > { %625 = vrot.lane.b32.xlu1 %v1574_v38, %s1248_s9  ;;  %v870_v39 = vpop.f32.mrb[1].mxu0 }
 0x22d   : > { %v1577_v40 = vpop.f32.mrb[2].mxu0 }
 0x22e   : > { %627 = vrot.lane.b32.xlu0 %v1577_v40, %s1248_s9  ;;  %v871_v41 = vpop.f32.mrb[3].mxu0 }
 0x230   : > { %631 = vrot.lane.b32.xlu1 %v1574_v38, %s1249_s16 }
 0x232   : > { %633 = vrot.lane.b32.xlu0 %v1577_v40, %s1249_s16 }
 0x234   : > { %525 = vrot.lane.b32.xlu1 %v450_v16, %s1247_s30 }
 0x236   : > { %527 = vrot.lane.b32.xlu0 %v451_v17, %s1247_s30 }
 0x238   : > { %531 = vrot.lane.b32.xlu1 %v450_v16, %s1246_s28 }
 0x23a   : > { %533 = vrot.lane.b32.xlu0 %v451_v17, %s1246_s28  ;;  %s1255_s28 = smov [#allocation11]  }
 0x23b   : > { %s1146_s30 = sshll.u32 %s1255_s28, 4  ;;  %s1147_s30 = int_to_ptr.vmem [resolvable:$false] %s1146_s30 }
 0x23c   : > { %472 = vrot.lane.b32.xlu1 %v1539_v12, %s1250_s13  ;;  %p1149_p4 = scmp.lt.s32.totalorder %s1676_s6, %s1147_s30 }
 0x23e   : > { %474 = vrot.lane.b32.xlu0 %v1544_v14, %s1250_s13 }
 0x240   : > { %539 = vrot.lane.b32.xlu1 %v1542_v13, %s1250_s13 }
 0x242   : > { %541 = vrot.lane.b32.xlu0 %v1546_v15, %s1250_s13 }
 0x244   : > { %478 = vrot.lane.b32.xlu1 %v1539_v12, %s1251_s1 }
 0x246   : > { %480 = vrot.lane.b32.xlu0 %v1544_v14, %s1251_s1 }
 0x248   : > { %545 = vrot.lane.b32.xlu1 %v1542_v13, %s1251_s1 }
 0x24a   : > { %547 = vrot.lane.b32.xlu0 %v1546_v15, %s1251_s1 }
 0x24c   : > { %484 = vrot.lane.b32.xlu1 %v1539_v12, %s1248_s9 }
 0x24e   : > { %486 = vrot.lane.b32.xlu0 %v1544_v14, %s1248_s9 }
 0x250   : > { %551 = vrot.lane.b32.xlu1 %v1542_v13, %s1248_s9 }
 0x252   : > { %553 = vrot.lane.b32.xlu0 %v1546_v15, %s1248_s9  ;;  %s1148_s9 = scalar_lea.vmem %s1147_s30, 256 }
 0x253   : > { %p1150_p8 = scmp.lt.s32.totalorder %s1148_s9, %s1142_s11 }
 0x254   : > { %490 = vrot.lane.b32.xlu1 %v1539_v12, %s1252_s14 }
 0x255   : > { %p1151_p0 = por %p1150_p8, %p1149_p4 }
 0x256   : > { %492 = vrot.lane.b32.xlu0 %v1544_v14, %s1252_s14 }
 0x257   : > { %p1152_p5 = pnand %p1151_p0, %p1145_p2 }
 0x258   : > { %557 = vrot.lane.b32.xlu1 %v1542_v13, %s1252_s14 }
 0x25a   : > { %559 = vrot.lane.b32.xlu0 %v1546_v15, %s1252_s14 }
 0x25c   : > { %597 = vrot.lane.b32.xlu1 %v1574_v38, %s1253_s12 }
 0x25e   : > { %619 = vrot.lane.b32.xlu0 %v1612_v50, %s1254_s8 }
 0x260   : > { %603 = vrot.lane.b32.xlu1 %v1574_v38, %s1250_s13 }
 0x262   : > { %599 = vrot.lane.b32.xlu0 %v1577_v40, %s1253_s12 }
 0x264   : > { %617 = vrot.lane.b32.xlu1 %v503_v53, %s1254_s8 }
 0x266   : > { %605 = vrot.lane.b32.xlu0 %v1577_v40, %s1250_s13 }
 0x29e   : > { %v626_v56 = vpop.permute.xlu1 %625 }
 0x2a0   : > { %v628_v58 = vpop.permute.xlu0 %627 }
 0x2a2   : > { %v632_v60 = vpop.permute.xlu1 %631 }
 0x2a3   : > { %v637_v62 = vsel %vm499_vm3, %v626_v56, %v632_v60 }
 0x2a4   : > { %v639_v63 = vmul.f32 %v637_v62, %v591_v61  ;;  %v634_v0 = vpop.permute.xlu0 %633 }
 0x2a5   : > { %v638_v2 = vsel %vm499_vm3, %v628_v58, %v634_v0 }
 0x2a6   : > { %v640_v3 = vmul.f32 %v638_v2, %v592_v1  ;;  %643 = vrot.lane.b32.xlu1 %v639_v63, %s1254_s8  ;;  %v526_v5 = vpop.permute.xlu1 %525 }
 0x2a7   : > { %v565_v28 = vsel %vm499_vm3, %v1572_v37, %v526_v5 }
 0x2a8   : > { %645 = vrot.lane.b32.xlu0 %v640_v3, %s1254_s8  ;;  %v528_v4 = vpop.permute.xlu0 %527 }
 0x2a9   : > { %v566_v29 = vsel %vm499_vm3, %v1569_v35, %v528_v4 }
 0x2aa   : > { %v532_v7 = vpop.permute.xlu1 %531 }
 0x2ab   : > { %v567_v30 = vsel %vm502_vm4, %v565_v28, %v532_v7 }
 0x2ac   : > { %v534_v6 = vpop.permute.xlu0 %533 }
 0x2ad   : > { %v568_v31 = vsel %vm502_vm4, %v566_v29, %v534_v6 }
 0x2ae   : > { %v473_v9 = vpop.permute.xlu1 %472 }
 0x2af   : > { %v506_v32 = vsel %vm505_vm5, %v503_v53, %v473_v9 }
 0x2b0   : > { %v475_v8 = vpop.permute.xlu0 %474 }
 0x2b1   : > { %v507_v36 = vsel %vm505_vm5, %v1612_v50, %v475_v8 }
 0x2b2   : > { %v540_v11 = vpop.permute.xlu1 %539 }
 0x2b3   : > { %v569_v33 = vsel %vm505_vm5, %v567_v30, %v540_v11 }
 0x2b4   : > { %v542_v10 = vpop.permute.xlu0 %541 }
 0x2b5   : > { %v570_v41 = vsel %vm505_vm5, %v568_v31, %v542_v10 }
 0x2b6   : > { %v479_v13 = vpop.permute.xlu1 %478 }
 0x2b7   : > { %v509_v37 = vsel %vm508_vm6, %v506_v32, %v479_v13 }
 0x2b8   : > { %v481_v12 = vpop.permute.xlu0 %480 }
 0x2b9   : > { %v510_v42 = vsel %vm508_vm6, %v507_v36, %v481_v12 }
 0x2ba   : > { %v546_v15 = vpop.permute.xlu1 %545 }
 0x2bb   : > { %v571_v39 = vsel %vm508_vm6, %v569_v33, %v546_v15 }
 0x2bc   : > { %v548_v14 = vpop.permute.xlu0 %547 }
 0x2bd   : > { %v572_v45 = vsel %vm508_vm6, %v570_v41, %v548_v14 }
 0x2be   : > { %v485_v17 = vpop.permute.xlu1 %484 }
 0x2bf   : > { %v512_v43 = vsel %vm511_vm7, %v509_v37, %v485_v17 }
 0x2c0   : > { %v487_v16 = vpop.permute.xlu0 %486 }
 0x2c1   : > { %v513_v50 = vsel %vm511_vm7, %v510_v42, %v487_v16 }
 0x2c2   : > { %v552_v19 = vpop.permute.xlu1 %551 }
 0x2c3   : > { %v573_v44 = vsel %vm511_vm7, %v571_v39, %v552_v19 }
 0x2c4   : > { %v554_v18 = vpop.permute.xlu0 %553 }
 0x2c5   : > { %v574_v51 = vsel %vm511_vm7, %v572_v45, %v554_v18 }
 0x2c6   : > { %v491_v21 = vpop.permute.xlu1 %490 }
 0x2c7   : > { %v515_v46 = vsel %vm514_vm8, %v512_v43, %v491_v21 }
 0x2c8   : > { %v493_v20 = vpop.permute.xlu0 %492  ;;  %v593_v55 = vmul.f32 %v515_v46, %v1574_v38 }
 0x2c9   : > { %v516_v53 = vsel %vm514_vm8, %v513_v50, %v493_v20 }
 0x2ca   : > { %v558_v23 = vpop.permute.xlu1 %557  ;;  %v594_v59 = vmul.f32 %v516_v53, %v1577_v40 }
 0x2cb   : > { %v575_v47 = vsel %vm514_vm8, %v573_v44, %v558_v23 }
 0x2cc   : > { %v560_v22 = vpop.permute.xlu0 %559 }
 0x2cd   : > { %v576_v54 = vsel %vm514_vm8, %v574_v51, %v560_v22 }
 0x2ce   : > { %v598_v25 = vpop.permute.xlu1 %597 }
 0x2d0   : > { %v620_v24 = vpop.permute.xlu0 %619 }
 0x2d1   : > { %v624_v60 = vmul.f32 %v620_v24, %v1577_v40 }
 0x2d2   : > { %v604_v27 = vpop.permute.xlu1 %603 }
 0x2d3   : > { %v609_v35 = vsel %vm505_vm5, %v598_v25, %v604_v27 }
 0x2d4   : > { %v600_v26 = vpop.permute.xlu0 %599  ;;  %v611_v52 = vmul.f32 %v609_v35, %v575_v47 }
 0x2d6   : > { %v618_v48 = vpop.permute.xlu1 %617  ;;  %v613_v61 = vadd.f32 %v611_v52, %v593_v55 }
 0x2d7   : > { %v623_v56 = vmul.f32 %v618_v48, %v1574_v38 }
 0x2d8   : > { %v606_v34 = vpop.permute.xlu0 %605 }
 0x2d9   : > { %v610_v49 = vsel %vm505_vm5, %v600_v26, %v606_v34 }
 0x2da   : > { %v612_v57 = vmul.f32 %v610_v49, %v576_v54 }
 0x2dc   : > { %v614_v0 = vadd.f32 %v612_v57, %v594_v59 }
 0x318   : > { %v644_v58 = vpop.permute.xlu1 %643 }
 0x319   : > { %v649_v62 = vadd.f32 %v644_v58, %v623_v56 }
 0x31a   : > { %v646_v63 = vpop.permute.xlu0 %645 }
 0x31b   : > { %v651_v1 = vsel %vm344_vm0, %v613_v61, %v649_v62  ;;  %v650_v2 = vadd.f32 %v646_v63, %v624_v60 }
 0x31c   : > { %v654_v4 = vsel %vm653_vm9, %v651_v1, %v1574_v38 }
 0x31d   : > { %v652_v3 = vsel %vm344_vm0, %v614_v0, %v650_v2 }
 0x31e   : > { %v655_v5 = vsel %vm653_vm9, %v652_v3, %v1577_v40 }
 0x31f   : > { %v853_v6 = vpack.c.bf16 %v655_v5, %v654_v4 }
 0x321   : > { %854 = vst [vmem:[%s332_s25] sm:$0xff] %v853_v6  }
 0x322   : > { %1155 = shalt.err (!%p1152_p5)
}
 0x323   : > { %s1156_s16 = scalar_lea.hbm %s1674_s26, 128  ;;  %s1160_s14 = scalar_lea.hbm %s1732_s5, 256 }
 0x324   : > { %p1157_p10 = scmp.ne.s32.totalorder %s1674_s26, %s1156_s16  ;;  %p1161_p3 = scmp.lt.u32.totalorder %s1674_s26, %s1732_s5 }
 0x325   : > { %p1162_p7 = scmp.lt.u32.totalorder %s1160_s14, %s1156_s16  ;;  %p1164_p12 = scmp.lt.u32.totalorder %s1156_s16, %s1674_s26 }
 0x326   : > { %p1158_p13 = pnand %p1157_p10, %p1461_p6 }
 0x327   : > { %p1163_p11 = por %p1162_p7, %p1161_p3 }
 0x328   : > { %p1159_p9 = pneg %p1158_p13 }
 0x329   : > { %p1165_p1 = por %p1164_p12, %p1163_p11 }
 0x32b   : > { %p1166_p2 = pnand %p1165_p1, %p1159_p9 }
 0x32d   : > { %1169 = shalt.err (!%p1166_p2)
}
 0x32e   : > { %s1256_s25 = smov 4  }
 0x32f   : > { %890 = dma.vmem_to_hbm [thread:$0]  (%p1461_p6), %s1676_s6, 128, %s1674_s26, %s667_s21, %s1254_s8, %s1254_s8, %s1256_s25  }
 0x330 PF: > { %s697_s15 = sand.u32 1, %s1212_s18   ;;  %p1758_p4 = scmp.ne.s32.totalorder %s1744_s29, 0 }
 0x331   : > { %p1759_p8 = scmp.ge.s32.totalorder %s1232_s23, 2  ;;  %s698_s3 = scalar_lea.sflag [#allocation4], %s697_s15 }
 0x333   : > { %p910_p0 = pnand %p1759_p8, %p1758_p4 }
 0x335   : > { %1207 = dma.done.wait (!%p910_p0), %s698_s3, 128  }
 0x336   : > { %1209 = vsyncadd (!%p910_p0), %s698_s3, 4294967168  ;;  %s23_s23 = sadd.s32 1, %s1232_s23   ;;  %s1760_s18 = smov %s1216_s19 }
 0x337   : > { %p20_p5 = scmp.ge.s32.totalorder %s23_s23, 4   ;;  %s1761_s19 = smov %s1220_s20 }
 0x338   : > { %s1762_s20 = smov %s1470_s7  ;;  %s1763_s21 = smov %s1228_s22 }
 0x339   : > { %s1764_s22 = smov %s1766_s24  ;;  %22 = sbr.rel (!%p20_p5) target bundleno = 11 (0xb), region = 103 }
 0x340   :  { %703 = vsyncpa [#allocation3], 1 }
 0x341   :  { %705 = vsyncpa [#allocation3 + $0x1], 1 }
 0x342   :  { %706 = vsyncpa [#allocation6], 1 }
 0x343   :  { %707 = vsyncpa [#allocation9], 1 }
 0x344   :  { %708 = vsyncpa [#allocation4], 1 }
 0x345   :  { %710 = vsyncpa [#allocation4 + $0x1], 1 }

</bundles_post_ra>
